<compile_context>
chip_gen: v5e
topology: v5e:2x2
jax: 0.10.0
libtpu: 0.0.40
codegen_flags: <defaults>
</compile_context>

<pallas_src>
import functools

import jax
import jax.numpy as jnp
from jax.experimental import pallas as pl
from jax.experimental.pallas import tpu as pltpu


def _round_up(x, m):
  return (x + m - 1) // m * m


def _pack_layout(dim_inputs, enc_hidden, num_units, pred_hidden):
  """Row offsets of each tensor inside the packed parameter slab."""
  cols = max(enc_hidden, num_units, pred_hidden)
  r_ew1 = 0
  r_ew2 = r_ew1 + dim_inputs
  r_pw1 = r_ew2 + enc_hidden
  r_pw2 = r_pw1 + num_units
  r_bias = _round_up(r_pw2 + pred_hidden, 8)
  total = _round_up(r_bias + 4, 8)
  return r_ew1, r_ew2, r_pw1, r_pw2, r_bias, total, cols


def pack_params(params, *, dim_inputs, enc_hidden, num_units, pred_hidden):
  """Pack the 8 weight/bias tensors into one f32 slab (fewer input DMAs)."""
  r_ew1, r_ew2, r_pw1, r_pw2, r_b, total, cols = _pack_layout(
      dim_inputs, enc_hidden, num_units, pred_hidden)
  wp = jnp.zeros((total, cols), jnp.float32)
  wp = wp.at[r_ew1:r_ew1 + dim_inputs, :enc_hidden].set(params["ew1"])
  wp = wp.at[r_ew2:r_ew2 + enc_hidden, :num_units].set(params["ew2"])
  wp = wp.at[r_pw1:r_pw1 + num_units, :pred_hidden].set(params["pw1"])
  wp = wp.at[r_pw2:r_pw2 + pred_hidden, :num_units].set(params["pw2"])
  wp = wp.at[r_b + 0, :enc_hidden].set(params["eb1"].reshape(enc_hidden))
  wp = wp.at[r_b + 1, :num_units].set(params["eb2"].reshape(num_units))
  wp = wp.at[r_b + 2, :pred_hidden].set(params["pb1"].reshape(pred_hidden))
  wp = wp.at[r_b + 3, :num_units].set(params["pb2"].reshape(num_units))
  return wp


def _fused_forward_kernel(x_ref, n1_ref, n2_ref, wp_ref, out_ref, *,
                          dim_inputs, enc_hidden, num_units, pred_hidden,
                          lane_pad, noise_scale=0.1):
  """add_noise (x2) -> one stacked encoder pass -> predictor, all in VMEM."""
  tb = x_ref.shape[0]
  d, eh, u, ph = dim_inputs, enc_hidden, num_units, pred_hidden
  _, r_ew2, r_pw1, r_pw2, r_b, _, _ = _pack_layout(d, eh, u, ph)

  # Static slices into the VMEM-resident packed parameter slab.
  ew1 = wp_ref[0:d, 0:eh]
  ew2 = wp_ref[r_ew2:r_ew2 + eh, 0:u]
  pw1 = wp_ref[r_pw1:r_pw1 + u, 0:ph]
  pw2 = wp_ref[r_pw2:r_pw2 + ph, 0:u]
  bias = wp_ref[r_b:r_b + 4, :]
  eb1 = bias[0:1, 0:eh]
  eb2 = bias[1:2, 0:u]
  pb1 = bias[2:3, 0:ph]
  pb2 = bias[3:4, 0:u]

  x = x_ref[...]
  x1 = x + noise_scale * n1_ref[...]
  x2 = x + noise_scale * n2_ref[...]

  # Stack the two noisy copies -> a single encoder matmul (halves MXU pushes).
  xin = jnp.concatenate([x1, x2], axis=0)                       # (2*tb, d)
  h = jnp.dot(xin, ew1, preferred_element_type=jnp.float32) + eb1
  h = jnp.maximum(h, 0.0)
  y = jnp.dot(h, ew2, preferred_element_type=jnp.float32) + eb2  # (2*tb, u)

  y1 = y[0:tb, :]
  y2 = y[tb:2 * tb, :]

  hp = jnp.dot(y1, pw1, preferred_element_type=jnp.float32) + pb1
  hp = jnp.maximum(hp, 0.0)
  w = jnp.dot(hp, pw2, preferred_element_type=jnp.float32) + pb2

  # Lane-dense single output slab: [y1 | y2 | w | zero-pad] -> width mult of 128.
  pieces = [y1, y2, w]
  if lane_pad:
    pieces.append(jnp.zeros((tb, lane_pad), jnp.float32))
  out_ref[...] = jnp.concatenate(pieces, axis=-1)


@functools.partial(
    jax.jit,
    static_argnames=("width", "height", "num_units", "enc_hidden", "pred_hidden"))
def model_forward(x, wpack, noise1, noise2, *, width=16, height=16,
                  num_units=64, enc_hidden=32, pred_hidden=4):
  """Flatten, then run the fused Pallas kernel over a batch grid.

  Args:
    x:      (B, height, width) f32 images.
    wpack:  packed parameter slab from pack_params().
    noise1: (B, width*height) f32 standard-normal draw for x1.
    noise2: (B, width*height) f32 standard-normal draw for x2.
  Returns:
    (y1, y2, w), each (B, num_units) f32.
  """
  d = width * height
  x_flat = x.reshape(-1, d).astype(jnp.float32)        # == x.view(-1, W*H)
  b = x_flat.shape[0]

  # Batch tiling: <=512 rows/tile (multiple of 8); pad B to a tile multiple.
  tb = min(512, _round_up(b, 8))
  b_pad = _round_up(b, tb)
  pad = b_pad - b
  if pad:
    x_flat = jnp.pad(x_flat, ((0, pad), (0, 0)))
    noise1 = jnp.pad(noise1, ((0, pad), (0, 0)))
    noise2 = jnp.pad(noise2, ((0, pad), (0, 0)))

  out_w = _round_up(3 * num_units, 128)                 # lane-dense output slab
  lane_pad = out_w - 3 * num_units

  kernel = functools.partial(
      _fused_forward_kernel,
      dim_inputs=d, enc_hidden=enc_hidden, num_units=num_units,
      pred_hidden=pred_hidden, lane_pad=lane_pad)

  flops = b_pad * (4 * (d * enc_hidden + enc_hidden * num_units)
                   + 4 * num_units * pred_hidden)
  bytes_accessed = 4 * (3 * b_pad * d + wpack.size + b_pad * out_w)

  out = pl.pallas_call(
      kernel,
      out_shape=jax.ShapeDtypeStruct((b_pad, out_w), jnp.float32),
      grid_spec=pltpu.PrefetchScalarGridSpec(
          num_scalar_prefetch=0,
          grid=(b_pad // tb,),
          in_specs=[
              pl.BlockSpec((tb, d), lambda i: (i, 0)),        # x
              pl.BlockSpec((tb, d), lambda i: (i, 0)),        # noise1
              pl.BlockSpec((tb, d), lambda i: (i, 0)),        # noise2
              pl.BlockSpec(wpack.shape, lambda i: (0, 0)),    # params (resident)
          ],
          out_specs=pl.BlockSpec((tb, out_w), lambda i: (i, 0)),
      ),
      compiler_params=pltpu.CompilerParams(
          dimension_semantics=("parallel",),                  # megacore on v7x
          vmem_limit_bytes=32 * 1024 * 1024,                  # safe on v5e/v6e/v7x
      ),
      cost_estimate=pl.CostEstimate(
          flops=flops, transcendentals=0, bytes_accessed=bytes_accessed),
  )(x_flat, noise1, noise2, wpack)

  out = out[:b]
  y1 = out[:, 0:num_units]
  y2 = out[:, num_units:2 * num_units]
  w = out[:, 2 * num_units:3 * num_units]
  return y1, y2, w


def make_params(key, *, num_units=64, dim_inputs=256, enc_hidden=32, pred_hidden=4):
  """PyTorch-Linear-style init, weights stored (in_features, out_features)."""
  ks = jax.random.split(key, 8)

  def lin(kw, kb, fan_in, fan_out):
    bound = 1.0 / jnp.sqrt(jnp.float32(fan_in))
    wgt = jax.random.uniform(kw, (fan_in, fan_out), jnp.float32, -bound, bound)
    bias = jax.random.uniform(kb, (1, fan_out), jnp.float32, -bound, bound)
    return wgt, bias

  ew1, eb1 = lin(ks[0], ks[1], dim_inputs, enc_hidden)
  ew2, eb2 = lin(ks[2], ks[3], enc_hidden, num_units)
  pw1, pb1 = lin(ks[4], ks[5], num_units, pred_hidden)
  pw2, pb2 = lin(ks[6], ks[7], pred_hidden, num_units)
  return dict(ew1=ew1, eb1=eb1, ew2=ew2, eb2=eb2,
              pw1=pw1, pb1=pb1, pw2=pw2, pb2=pb2)


def reference_forward(x, params, noise1, noise2, *, width=16, height=16):
  """Plain-JAX reference of the same math (correctness check)."""
  d = width * height
  xf = x.reshape(-1, d).astype(jnp.float32)
  x1 = xf + 0.1 * noise1
  x2 = xf + 0.1 * noise2

  def enc(z):
    h = jnp.maximum(z @ params["ew1"] + params["eb1"], 0.0)
    return h @ params["ew2"] + params["eb2"]

  y1 = enc(x1)
  y2 = enc(x2)
  hp = jnp.maximum(y1 @ params["pw1"] + params["pb1"], 0.0)
  w = hp @ params["pw2"] + params["pb2"]
  return y1, y2, w


if __name__ == "__main__":
  WIDTH, HEIGHT = 16, 16
  NUM_UNITS, ENC_HIDDEN, PRED_HIDDEN = 64, 32, 4
  BATCH = 2

  key = jax.random.PRNGKey(0)
  k_x, k_p, k_n1, k_n2 = jax.random.split(key, 4)

  x = jax.random.normal(k_x, (BATCH, HEIGHT, WIDTH), jnp.float32)
  params = make_params(k_p, num_units=NUM_UNITS, dim_inputs=WIDTH * HEIGHT,
                       enc_hidden=ENC_HIDDEN, pred_hidden=PRED_HIDDEN)
  wpack = pack_params(params, dim_inputs=WIDTH * HEIGHT, enc_hidden=ENC_HIDDEN,
                      num_units=NUM_UNITS, pred_hidden=PRED_HIDDEN)
  noise1 = jax.random.normal(k_n1, (BATCH, WIDTH * HEIGHT), jnp.float32)
  noise2 = jax.random.normal(k_n2, (BATCH, WIDTH * HEIGHT), jnp.float32)

  y1, y2, w = model_forward(x, wpack, noise1, noise2,
                            width=WIDTH, height=HEIGHT, num_units=NUM_UNITS,
                            enc_hidden=ENC_HIDDEN, pred_hidden=PRED_HIDDEN)
  jax.block_until_ready((y1, y2, w))

  r1, r2, rw = reference_forward(x, params, noise1, noise2,
                                 width=WIDTH, height=HEIGHT)
  assert y1.shape == (BATCH, NUM_UNITS)
  assert y2.shape == (BATCH, NUM_UNITS)
  assert w.shape == (BATCH, NUM_UNITS)
  assert jnp.allclose(y1, r1, atol=1e-4, rtol=1e-4), "y1 mismatch"
  assert jnp.allclose(y2, r2, atol=1e-4, rtol=1e-4), "y2 mismatch"
  assert jnp.allclose(w, rw, atol=1e-4, rtol=1e-4), "w mismatch"

  print("KERNEL_OK")
</pallas_src>

<mosaic_0001>
module attributes {stable_mosaic.version = 11 : i64} {
  func.func @_fused_forward_kernel(%arg0: i32, %arg1: memref<8x256xf32, #tpu.memory_space<vmem>>, %arg2: memref<8x256xf32, #tpu.memory_space<vmem>>, %arg3: memref<8x256xf32, #tpu.memory_space<vmem>>, %arg4: memref<368x64xf32, #tpu.memory_space<vmem>>, %arg5: memref<8x256xf32, #tpu.memory_space<vmem>>) attributes {dimension_semantics = [#tpu.dimension_semantics<parallel>], iteration_bounds = array<i64: 1>, scalar_prefetch = 0 : i64, scratch_operands = 0 : i64, tpu.core_type = #tpu.core_type<tc>, window_params = [{transform_indices = @transform_0, window_bounds = array<i64: 8, 256>}, {transform_indices = @transform_1, window_bounds = array<i64: 8, 256>}, {transform_indices = @transform_2, window_bounds = array<i64: 8, 256>}, {pipeline_mode = #tpu.pipeline_mode<synchronous>, transform_indices = @transform_3, window_bounds = array<i64: 368, 64>}, {transform_indices = @transform_4, window_bounds = array<i64: 8, 256>}]} {
    %c0 = arith.constant 0 : index
    %c0_0 = arith.constant 0 : index
    %0 = vector.load %arg4[%c0, %c0_0] : memref<368x64xf32, #tpu.memory_space<vmem>>, vector<256x32xf32>
    %c256 = arith.constant 256 : index
    %c0_1 = arith.constant 0 : index
    %1 = vector.load %arg4[%c256, %c0_1] : memref<368x64xf32, #tpu.memory_space<vmem>>, vector<32x64xf32>
    %c288 = arith.constant 288 : index
    %c0_2 = arith.constant 0 : index
    %2 = vector.load %arg4[%c288, %c0_2] : memref<368x64xf32, #tpu.memory_space<vmem>>, vector<64x4xf32>
    %c352 = arith.constant 352 : index
    %c0_3 = arith.constant 0 : index
    %3 = vector.load %arg4[%c352, %c0_3] : memref<368x64xf32, #tpu.memory_space<vmem>>, vector<4x64xf32>
    %c360 = arith.constant 360 : index
    %c0_4 = arith.constant 0 : index
    %4 = vector.load %arg4[%c360, %c0_4] : memref<368x64xf32, #tpu.memory_space<vmem>>, vector<4x64xf32>
    %5 = vector.extract_strided_slice %4 {offsets = [0, 0], sizes = [1, 32], strides = [1, 1]} : vector<4x64xf32> to vector<1x32xf32>
    %6 = vector.extract_strided_slice %4 {offsets = [1, 0], sizes = [1, 64], strides = [1, 1]} : vector<4x64xf32> to vector<1x64xf32>
    %7 = vector.extract_strided_slice %4 {offsets = [2, 0], sizes = [1, 4], strides = [1, 1]} : vector<4x64xf32> to vector<1x4xf32>
    %8 = vector.extract_strided_slice %4 {offsets = [3, 0], sizes = [1, 64], strides = [1, 1]} : vector<4x64xf32> to vector<1x64xf32>
    %c0_5 = arith.constant 0 : index
    %c0_6 = arith.constant 0 : index
    %9 = vector.load %arg1[%c0_5, %c0_6] : memref<8x256xf32, #tpu.memory_space<vmem>>, vector<8x256xf32>
    %c0_7 = arith.constant 0 : index
    %c0_8 = arith.constant 0 : index
    %10 = vector.load %arg2[%c0_7, %c0_8] : memref<8x256xf32, #tpu.memory_space<vmem>>, vector<8x256xf32>
    %cst = arith.constant 1.000000e-01 : f32
    %11 = vector.broadcast %cst : f32 to vector<8x256xf32>
    %12 = arith.mulf %11, %10 : vector<8x256xf32>
    %13 = arith.addf %9, %12 : vector<8x256xf32>
    %c0_9 = arith.constant 0 : index
    %c0_10 = arith.constant 0 : index
    %14 = vector.load %arg3[%c0_9, %c0_10] : memref<8x256xf32, #tpu.memory_space<vmem>>, vector<8x256xf32>
    %cst_11 = arith.constant 1.000000e-01 : f32
    %15 = vector.broadcast %cst_11 : f32 to vector<8x256xf32>
    %16 = arith.mulf %15, %14 : vector<8x256xf32>
    %17 = arith.addf %9, %16 : vector<8x256xf32>
    %18 = tpu.concatenate %13, %17 in 0 : vector<8x256xf32>, vector<8x256xf32> -> vector<16x256xf32>
    %cst_12 = arith.constant dense<0.000000e+00> : vector<16x32xf32>
    %19 = tpu.matmul %18, %0, %cst_12 {dimension_numbers = #tpu.dot_dimension_numbers<[1], [0], [0], [1], [0, 0, 1, 1], [], []>} : vector<16x256xf32>, vector<256x32xf32>, vector<16x32xf32> -> vector<16x32xf32>
    %20 = vector.broadcast %5 : vector<1x32xf32> to vector<16x32xf32>
    %21 = arith.addf %19, %20 : vector<16x32xf32>
    %cst_13 = arith.constant 0.000000e+00 : f32
    %22 = vector.broadcast %cst_13 : f32 to vector<16x32xf32>
    %23 = arith.maximumf %21, %22 : vector<16x32xf32>
    %cst_14 = arith.constant dense<0.000000e+00> : vector<16x64xf32>
    %24 = tpu.matmul %23, %1, %cst_14 {dimension_numbers = #tpu.dot_dimension_numbers<[1], [0], [0], [1], [0, 0, 1, 1], [], []>} : vector<16x32xf32>, vector<32x64xf32>, vector<16x64xf32> -> vector<16x64xf32>
    %25 = vector.broadcast %6 : vector<1x64xf32> to vector<16x64xf32>
    %26 = arith.addf %24, %25 : vector<16x64xf32>
    %27 = vector.extract_strided_slice %26 {offsets = [0, 0], sizes = [8, 64], strides = [1, 1]} : vector<16x64xf32> to vector<8x64xf32>
    %28 = vector.extract_strided_slice %26 {offsets = [8, 0], sizes = [8, 64], strides = [1, 1]} : vector<16x64xf32> to vector<8x64xf32>
    %cst_15 = arith.constant dense<0.000000e+00> : vector<8x4xf32>
    %29 = tpu.matmul %27, %2, %cst_15 {dimension_numbers = #tpu.dot_dimension_numbers<[1], [0], [0], [1], [0, 0, 1, 1], [], []>} : vector<8x64xf32>, vector<64x4xf32>, vector<8x4xf32> -> vector<8x4xf32>
    %30 = vector.broadcast %7 : vector<1x4xf32> to vector<8x4xf32>
    %31 = arith.addf %29, %30 : vector<8x4xf32>
    %cst_16 = arith.constant 0.000000e+00 : f32
    %32 = vector.broadcast %cst_16 : f32 to vector<8x4xf32>
    %33 = arith.maximumf %31, %32 : vector<8x4xf32>
    %cst_17 = arith.constant dense<0.000000e+00> : vector<8x64xf32>
    %34 = tpu.matmul %33, %3, %cst_17 {dimension_numbers = #tpu.dot_dimension_numbers<[1], [0], [0], [1], [0, 0, 1, 1], [], []>} : vector<8x4xf32>, vector<4x64xf32>, vector<8x64xf32> -> vector<8x64xf32>
    %35 = vector.broadcast %8 : vector<1x64xf32> to vector<8x64xf32>
    %36 = arith.addf %34, %35 : vector<8x64xf32>
    %cst_18 = arith.constant 0.000000e+00 : f32
    %37 = vector.broadcast %cst_18 : f32 to vector<8x64xf32>
    %38 = tpu.concatenate %27, %28, %36, %37 in 1 : vector<8x64xf32>, vector<8x64xf32>, vector<8x64xf32>, vector<8x64xf32> -> vector<8x256xf32>
    %c0_19 = arith.constant 0 : index
    %c0_20 = arith.constant 0 : index
    %39 = vector.load %arg5[%c0_19, %c0_20] : memref<8x256xf32, #tpu.memory_space<vmem>>, vector<8x256xf32>
    tpu.vector_store %arg5[%c0_19, %c0_20], %38 {strides = array<i32>} : memref<8x256xf32, #tpu.memory_space<vmem>>, vector<8x256xf32>,
    return
  }
  func.func @transform_0(%arg0: i32) -> (i32, i32) {
    %c0_i32 = arith.constant 0 : i32
    %c0_i32_0 = arith.constant 0 : i32
    return %arg0, %c0_i32 : i32, i32
  }
  func.func @transform_1(%arg0: i32) -> (i32, i32) {
    %c0_i32 = arith.constant 0 : i32
    %c0_i32_0 = arith.constant 0 : i32
    return %arg0, %c0_i32 : i32, i32
  }
  func.func @transform_2(%arg0: i32) -> (i32, i32) {
    %c0_i32 = arith.constant 0 : i32
    %c0_i32_0 = arith.constant 0 : i32
    return %arg0, %c0_i32 : i32, i32
  }
  func.func @transform_3(%arg0: i32) -> (i32, i32) {
    %c0_i32 = arith.constant 0 : i32
    %c0_i32_0 = arith.constant 0 : i32
    %c0_i32_1 = arith.constant 0 : i32
    return %c0_i32, %c0_i32_0 : i32, i32
  }
  func.func @transform_4(%arg0: i32) -> (i32, i32) {
    %c0_i32 = arith.constant 0 : i32
    %c0_i32_0 = arith.constant 0 : i32
    return %arg0, %c0_i32 : i32, i32
  }
}

</mosaic_0001>

<bundles_post_ra>
// kernel: model_forward.1
= control target key start
LH: loop header
LB: loop body
LE: loop exit
PB: predicated region body
PF: predicated region fallthrough
CT: control target
= control target key end

     0   :  { %vm127_vm0 = vcmask 261120   ;;  %vm188_vm1 = vcmask 1043456   ;;  %vm158_vm2 = vcmask 523264   ;;  %s230_s10 = smov 64   ;;  %vm184_vm3 = vcmask 31744   ;;  %s421_s3 = inlined_call_operand.vmem [shape: f32[368,64], index: 3, kind: input, shape index: {}]   ;;  %s422_s1 = inlined_call_operand.vmem [shape: f32[8,256], index: 1, kind: input, shape index: {}]   ;;  %s423_s0 = inlined_call_operand.vmem [shape: f32[8,256], index: 0, kind: input, shape index: {}]   ;;  %s424_s2 = inlined_call_operand.vmem [shape: f32[8,256], index: 2, kind: input, shape index: {}]   ;;  %s425_s4 = inlined_call_operand.vmem [shape: f32[8,256], index: 4, kind: output, shape index: {}]  }
   0x1   :  { %v32_v0 = vld [vmem:[%s421_s3 + $0x78] sm:$0xff]  ;;  %v31_v1 = vld [vmem:[%s421_s3 + $0x70] sm:$0xff]  ;;  %v30_v4 = vld [vmem:[%s421_s3 + $0x68] sm:$0xff] }
   0x2   :  { %v48_v2 = vld [vmem:[%s421_s3 + $0xf8] sm:$0xff]  ;;  %78 = vmatpush.msra.mxu0 %v32_v0  ;;  %v47_v3 = vld [vmem:[%s421_s3 + $0xf0] sm:$0xff]  ;;  %v46_v5 = vld [vmem:[%s421_s3 + $0xe8] sm:$0xff] }
   0x3   :  { %101 = vmatpush.msra.mxu1 %v48_v2  ;;  %v29_v6 = vld [vmem:[%s421_s3 + $0x60] sm:$0xff]  ;;  %v28_v8 = vld [vmem:[%s421_s3 + $0x58] sm:$0xff]  ;;  %v27_v10 = vld [vmem:[%s421_s3 + $0x50] sm:$0xff] }
   0x4   :  { %79 = vmatpush.msra.mxu0 %v31_v1  ;;  %v45_v7 = vld [vmem:[%s421_s3 + $0xe0] sm:$0xff]  ;;  %v44_v9 = vld [vmem:[%s421_s3 + $0xd8] sm:$0xff]  ;;  %v43_v11 = vld [vmem:[%s421_s3 + $0xd0] sm:$0xff] }
   0x5   :  { %102 = vmatpush.msra.mxu1 %v47_v3  ;;  %v26_v12 = vld [vmem:[%s421_s3 + $0x48] sm:$0xff]  ;;  %v25_v14 = vld [vmem:[%s421_s3 + $0x40] sm:$0xff]  ;;  %v24_v16 = vld [vmem:[%s421_s3 + $0x38] sm:$0xff] }
   0x6   :  { %80 = vmatpush.msra.mxu0 %v30_v4  ;;  %v42_v13 = vld [vmem:[%s421_s3 + $0xc8] sm:$0xff]  ;;  %v41_v15 = vld [vmem:[%s421_s3 + $0xc0] sm:$0xff]  ;;  %v40_v17 = vld [vmem:[%s421_s3 + $0xb8] sm:$0xff] }
   0x7   :  { %103 = vmatpush.msra.mxu1 %v46_v5  ;;  %v23_v18 = vld [vmem:[%s421_s3 + $0x30] sm:$0xff]  ;;  %v22_v20 = vld [vmem:[%s421_s3 + $0x28] sm:$0xff]  ;;  %v21_v22 = vld [vmem:[%s421_s3 + $0x20] sm:$0xff] }
   0x8   :  { %81 = vmatpush.msra.mxu0 %v29_v6  ;;  %v39_v19 = vld [vmem:[%s421_s3 + $0xb0] sm:$0xff]  ;;  %v38_v21 = vld [vmem:[%s421_s3 + $0xa8] sm:$0xff]  ;;  %v37_v23 = vld [vmem:[%s421_s3 + $0xa0] sm:$0xff] }
   0x9   :  { %104 = vmatpush.msra.mxu1 %v45_v7  ;;  %v65_v24 = vld [vmem:[%s422_s1] sm:$0xff]  ;;  %v66_v25 = vld [vmem:[%s422_s1 + $0x8] sm:$0xff]  ;;  %v20_v26 = vld [vmem:[%s421_s3 + $0x18] sm:$0xff] }
   0xa   :  { %82 = vmatpush.msra.mxu0 %v28_v8  ;;  %v36_v27 = vld [vmem:[%s421_s3 + $0x98] sm:$0xff]  ;;  %v19_v28 = vld [vmem:[%s421_s3 + $0x10] sm:$0xff]  ;;  %v67_v30 = vmul.f32 0.1, %v65_v24  ;;  %v68_v31 = vmul.f32 0.1, %v66_v25 }
   0xb   :  { %105 = vmatpush.msra.mxu1 %v44_v9  ;;  %v35_v29 = vld [vmem:[%s421_s3 + $0x90] sm:$0xff]  ;;  %v63_v32 = vld [vmem:[%s423_s0] sm:$0xff]  ;;  %v64_v33 = vld [vmem:[%s423_s0 + $0x8] sm:$0xff] }
   0xc   :  { %83 = vmatpush.msra.mxu0 %v27_v10  ;;  %v18_v34 = vld [vmem:[%s421_s3 + $0x8] sm:$0xff]  ;;  %v17_v36 = vld [vmem:[%s421_s3] sm:$0xff]  ;;  %v69_v37 = vadd.f32 %v67_v30, %v63_v32  ;;  %v70_v39 = vadd.f32 %v68_v31, %v64_v33  ;;  %v52_v46 = vld [vmem:[%s421_s3 + $0x118] sm:$0xff] }
   0xd   :  { %106 = vmatpush.msra.mxu1 %v43_v11  ;;  %v34_v35 = vld [vmem:[%s421_s3 + $0x88] sm:$0xff]  ;;  %v33_v38 = vld [vmem:[%s421_s3 + $0x80] sm:$0xff]  ;;  %146 = vmatpush.msra.mxu2 %v52_v46  ;;  %v51_v47 = vld [vmem:[%s421_s3 + $0x110] sm:$0xff] }
   0xe   :  { %84 = vmatpush.msra.mxu0 %v26_v12  ;;  %v71_v40 = vld [vmem:[%s424_s2] sm:$0xff]  ;;  %v72_v41 = vld [vmem:[%s424_s2 + $0x8] sm:$0xff]  ;;  %v60_v50 = vld [vmem:[%s421_s3 + $0x158] sm:$0xff] }
   0xf   :  { %107 = vmatpush.msra.mxu1 %v42_v13  ;;  %v73_v42 = vmul.f32 0.1, %v71_v40  ;;  %v74_v43 = vmul.f32 0.1, %v72_v41  ;;  %147 = vmatpush.msra.mxu2 %v51_v47  ;;  %v50_v48 = vld [vmem:[%s421_s3 + $0x108] sm:$0xff]  ;;  %v49_v49 = vld [vmem:[%s421_s3 + $0x100] sm:$0xff] }
  0x10   :  { %85 = vmatpush.msra.mxu0 %v25_v14  ;;  %v59_v51 = vld [vmem:[%s421_s3 + $0x150] sm:$0xff]  ;;  %170 = vmatpush.msra.mxu3 %v60_v50  ;;  %v58_v52 = vld [vmem:[%s421_s3 + $0x148] sm:$0xff]  ;;  %v57_v53 = vld [vmem:[%s421_s3 + $0x140] sm:$0xff] }
  0x11   :  { %108 = vmatpush.msra.mxu1 %v41_v15  ;;  %v75_v44 = vadd.f32 %v73_v42, %v63_v32  ;;  %v76_v45 = vadd.f32 %v74_v43, %v64_v33  ;;  %148 = vmatpush.msra.mxu2 %v50_v48  ;;  %v56_v54 = vld [vmem:[%s421_s3 + $0x138] sm:$0xff]  ;;  %v55_v55 = vld [vmem:[%s421_s3 + $0x130] sm:$0xff]  ;;  %v62_v56 = vld [vmem:[%s421_s3 + $0x168] sm:$0xf] }
  0x12   :  { %86 = vmatpush.msra.mxu0 %v24_v16  ;;  %171 = vmatpush.msra.mxu3 %v59_v51  ;;  %v77_v57 = vperm.slane %v62_v56, 0  ;;  %v54_v4 = vld [vmem:[%s421_s3 + $0x128] sm:$0xff]  ;;  %v53_v5 = vld [vmem:[%s421_s3 + $0x120] sm:$0xff]  ;;  %v126_v7 = vperm.slane %v62_v56, 1  ;;  %v157_v14 = vperm.slane %v62_v56, 2 }
  0x13   :  { %109 = vmatpush.msra.mxu1 %v40_v17  ;;  %149 = vmatpush.msra.mxu2 %v49_v49  ;;  %v61_v6 = vld [vmem:[%s421_s3 + $0x160] sm:$0xf] }
  0x14   :  { %87 = vmatpush.msra.mxu0 %v23_v18  ;;  %172 = vmatpush.msra.mxu3 %v58_v52  ;;  %v183_v18 = vperm.slane %v62_v56, 3 }
  0x15   :  { %110 = vmatpush.msra.mxu1 %v39_v19  ;;  %227 = vmatpush.msk.msrb.mxu2 %vm188_vm1, %v61_v6 }
  0x16   :  { %88 = vmatpush.msra.mxu0 %v22_v20  ;;  %173 = vmatpush.msra.mxu3 %v57_v53 }
  0x17   :  { %111 = vmatpush.msra.mxu1 %v38_v21 }
  0x18   :  { %89 = vmatpush.msra.mxu0 %v21_v22  ;;  %174 = vmatpush.msra.mxu3 %v56_v54 }
  0x19   :  { %112 = vmatpush.msra.mxu1 %v37_v23 }
  0x1a   :  { %90 = vmatpush.msra.mxu0 %v20_v26  ;;  %175 = vmatpush.msra.mxu3 %v55_v55 }
  0x1b   :  { %113 = vmatpush.msra.mxu1 %v36_v27 }
  0x1c   :  { %91 = vmatpush.msra.mxu0 %v19_v28  ;;  %176 = vmatpush.msra.mxu3 %v54_v4 }
  0x1d   :  { %114 = vmatpush.msra.mxu1 %v35_v29 }
  0x1e   :  { %92 = vmatpush.msra.mxu0 %v18_v34  ;;  %177 = vmatpush.msra.mxu3 %v53_v5 }
  0x1f   :  { %115 = vmatpush.msra.mxu1 %v34_v35 }
  0x20   :  { %93 = vmatpush.msra.mxu0 %v17_v36 }
  0x21   :  { %116 = vmatpush.msra.mxu1 %v33_v38  ;;  %94 = vmatmul.f32.vlgmr.msra.gmra.mxu0 %v69_v37 }
  0x22   :  { %117 = vmatmul.f32.vlgmr.msra.gmra.mxu1 %v70_v39 }
  0x29   :  { %97 = vmatmul.f32.gmra.mxu0 %v75_v44 }
  0x2a   :  { %120 = vmatmul.f32.gmra.mxu1 %v76_v45 }
  0x9e   :  { %v95_v58 = vpop.f32.mrf.mxu0 }
  0x9f   :  { %v118_v59 = vpop.f32.mrf.mxu1  ;;  %v96_v60 = vadd.f32 %v95_v58, %v77_v57 }
  0xa1   :  { %v119_v61 = vadd.f32 %v118_v59, %v96_v60 }
  0xa3   :  { %v124_v62 = vmax.f32 %v119_v61, 0.0 }
  0xa5   :  { %224 = vmatmul.msk.f32.vlgmr.msra.gmra.mxu2 %vm127_vm0, %v124_v62 }
  0xa6   :  { %v98_v63 = vpop.f32.mrf.mxu0 }
  0xa7   :  { %v121_v0 = vpop.f32.mrf.mxu1  ;;  %v99_v1 = vadd.f32 %v98_v63, %v77_v57 }
  0xa9   :  { %v122_v2 = vadd.f32 %v121_v0, %v99_v1 }
  0xab   :  { %v125_v3 = vmax.f32 %v122_v2, 0.0 }
  0xad   :  { %225 = vmatmul.msk.f32.gmra.mxu2 %vm127_vm0, %v125_v3 }
 0x128   :  { %v151_v8 = vpop.f32.mrf.mxu2 }
 0x129   :  { %v152_v9 = vadd.f32 %v151_v8, %v126_v7 }
 0x12b   :  { %226 = vmatmul.msk.f32.vlgmr.msra.gmra.mxu3 %vm158_vm2, %v152_v9 }
 0x130   :  { %v154_v10 = vpop.f32.mrf.mxu2 }
 0x131   :  { %v155_v11 = vadd.f32 %v154_v10, %v126_v7 }
 0x133   :  { %213 = vrot.lane.b32.xlu0 %v155_v11, %s230_s10 }
 0x1a5   :  { %v214_v12 = vpop.permute.xlu0 %213 }
 0x1a6   :  { %v216_v13 = vsel %vm158_vm2, %v152_v9, %v214_v12 }
 0x1a7   :  { %218 = vst [vmem:[%s425_s4] sm:$0xff] %v216_v13 }
 0x1ae   :  { %v179_v15 = vpop.f32.mrf.mxu3 }
 0x1af   :  { %v180_v16 = vadd.f32 %v179_v15, %v157_v14 }
 0x1b1   :  { %v182_v17 = vmax.f32 %v180_v16, 0.0 }
 0x1b3   :  { %228 = vmatmul.msk.f32.vlgmr.msrb.gmra.mxu2 %vm184_vm3, %v182_v17 }
 0x236   :  { %v209_v19 = vpop.f32.mrf.mxu2 }
 0x237   :  { %v210_v20 = vadd.f32 %v209_v19, %v183_v18 }
 0x239   :  { %v217_v21 = vsel %vm158_vm2, %v210_v20, 0.0 }
 0x23a   :  { %219 = vst [vmem:[%s425_s4 + $0x8] sm:$0xff] %v217_v21 }

</bundles_post_ra>
